<compile_context>
chip_gen: v7x
topology: tpu7x:2x2x1
jax: 0.10.0
libtpu: 0.0.40
codegen_flags: <defaults>
</compile_context>

<pallas_src>
import jax
import jax.numpy as jnp
from jax.experimental import pallas as pl
from jax.experimental.pallas import tpu as pltpu


# -----------------------------------------------------------------------------
# Kernel
# -----------------------------------------------------------------------------
def _bp_ae_kernel(x_ref, w_enc_ref, b_enc_ref, w_dec_ref, b_dec_ref,
                  z_ref, out_ref):
    # Encoder: z = x @ W_enc + b_enc   (f32 accumulation on the MXU).
    x = x_ref[...].astype(w_enc_ref.dtype)
    z = jnp.dot(x, w_enc_ref[...], preferred_element_type=jnp.float32)
    z = z + b_enc_ref[...]                       # (1, latent_pad) broadcasts
    z_ref[...] = z.astype(z_ref.dtype)

    # Decoder: out = z @ W_dec + b_dec, reusing the on-chip f32 z (cast only
    # for the MXU input dtype so a bf16 weight path gets bf16 x bf16 matmuls).
    out = jnp.dot(z.astype(w_dec_ref.dtype), w_dec_ref[...],
                  preferred_element_type=jnp.float32)
    out = out + b_dec_ref[...]                   # (1, seq_len) broadcasts
    out_ref[...] = out.astype(out_ref.dtype)


# -----------------------------------------------------------------------------
# Helpers
# -----------------------------------------------------------------------------
def _round_up(x, m):
    return (x + m - 1) // m * m


def _vmem_capacity_bytes():
    try:
        return int(pltpu.get_tpu_info().vmem_capacity_bytes)
    except Exception:
        return 64 << 20                      # conservative (v7x-sized) default


def prepare_bp_ae_params(w_enc, b_enc, w_dec, b_dec, *, use_bf16=False):
    """Pad the latent dim to a lane-dense multiple of 128 and (optionally)
    cast the weights to bf16 ONCE, outside the per-call path.

    Args are the already-transposed PyTorch weights:
      w_enc: (seq_len, latent_dim), b_enc: (latent_dim,)
      w_dec: (latent_dim, seq_len), b_dec: (seq_len,)
    Zero-padding is semantics-preserving (extra z columns are exactly 0,
    extra w_dec rows are 0).
    """
    seq_len, latent_dim = w_enc.shape
    latent_pad = _round_up(max(latent_dim, 1), 128)
    if latent_pad != latent_dim:
        pad = latent_pad - latent_dim
        w_enc = jnp.pad(w_enc, ((0, 0), (0, pad)))
        b_enc = jnp.pad(b_enc, (0, pad))
        w_dec = jnp.pad(w_dec, ((0, pad), (0, 0)))
    w_dtype = jnp.bfloat16 if use_bf16 else w_enc.dtype
    return {
        "w_enc": w_enc.astype(w_dtype),
        "b_enc": b_enc.reshape(1, latent_pad).astype(jnp.float32),
        "w_dec": w_dec.astype(w_dtype),
        "b_dec": b_dec.reshape(1, seq_len).astype(jnp.float32),
        "seq_len": seq_len,
        "latent_dim": latent_dim,
        "latent_pad": latent_pad,
    }


def _pick_block_batch(batch, per_row_act_bytes, act_budget, override=None):
    """Pick (tile_batch, padded_batch).

    Prefers a multiple-of-8 divisor of the batch (no wrapper pad/slice passes)
    and >= 2 grid tiles (keeps both v7x TensorCores busy) unless that would
    shrink the tile by more than 4x.
    """
    cap = min(1024, max(8, (act_budget // max(per_row_act_bytes, 1)) // 8 * 8))
    if override is not None:
        if override <= 0:
            raise ValueError("block_batch must be positive")
        if override != batch and override % 8 != 0:
            raise ValueError("block_batch must equal the batch or be a multiple of 8")
        return override, _round_up(batch, override)
    if batch % 8 != 0:
        if batch <= cap:
            return batch, batch              # full-extent single tile, no pad
        padded = _round_up(batch, 8)
    else:
        padded = batch
    cands = [d for d in range(8, min(cap, padded) + 1, 8) if padded % d == 0]
    if not cands:                            # only for degenerate tiny batches
        return padded, padded
    best1 = max(cands)
    two = [d for d in cands if padded // d >= 2]
    if two:
        best2 = max(two)
        if best2 * 4 >= best1:
            return best2, padded
    return best1, padded


# -----------------------------------------------------------------------------
# Forward
# -----------------------------------------------------------------------------
def bp_ae_forward(x, params, *, block_batch=None, out_dtype=None, x_buffers=2):
    """Fused BP_AE forward.

    Args:
      x:       (batch, seq_len) activations (f32, or bf16 to halve HBM reads).
      params:  dict from prepare_bp_ae_params().
      block_batch: optional batch-tile override (multiple of 8, or == batch).
      out_dtype:   output dtype (default x.dtype; bf16 halves store traffic).
      x_buffers:   pipeline depth for the streamed x tile (2 = double buffer).

    Returns:
      (reconstruction (batch, seq_len), bottleneck (batch, latent_dim))
    """
    batch, seq_len = x.shape
    if seq_len != params["seq_len"]:
        raise ValueError(f"x seq_len {seq_len} != params seq_len {params['seq_len']}")
    latent_dim = params["latent_dim"]
    latent_pad = params["latent_pad"]
    out_dtype = jnp.dtype(out_dtype if out_dtype is not None else x.dtype)

    in_size = jnp.dtype(x.dtype).itemsize
    w_size = jnp.dtype(params["w_enc"].dtype).itemsize
    out_size = out_dtype.itemsize

    # ---- generation-aware VMEM budget (dtype-aware, no double counting) ----
    vmem_cap = _vmem_capacity_bytes()
    big_vmem = vmem_cap >= (100 << 20)            # v5e/v6e: 128 MiB; v7x: 64 MiB
    scoped_cap = (96 << 20) if big_vmem else (40 << 20)   # tile-choice budget
    limit_cap = (100 << 20) if big_vmem else (44 << 20)   # requested limit cap
    headroom = 4 << 20

    def w_bytes(bufs):
        # Both weight matrices + both (f32) biases, times their buffer count.
        return bufs * (2 * seq_len * latent_pad * w_size
                       + (latent_pad + seq_len) * 4)

    def act_bytes(tb):
        # x tile (x_buffers deep) + double-buffered z / out tiles.
        return tb * (x_buffers * seq_len * in_size
                     + 2 * latent_pad * out_size
                     + 2 * seq_len * out_size)

    if w_bytes(1) + act_bytes(8) + headroom > scoped_cap:
        # TODO(synk): add a seq_len-tiled weight path (stream W_enc K-slices /
        # W_dec N-slices) for seq_len * latent_pad too large to keep resident.
        raise NotImplementedError(
            "BP_AE weights do not fit in VMEM as residents for "
            f"seq_len={seq_len}, latent_pad={latent_pad}")

    act_budget = scoped_cap - w_bytes(1) - headroom
    tb, padded_batch = _pick_block_batch(batch, act_bytes(1), act_budget,
                                         block_batch)
    num_tiles = padded_batch // tb

    x_in = x
    if padded_batch != batch:
        x_in = jnp.pad(x, ((0, padded_batch - batch), (0, 0)))

    def run(single_buffer_weights):
        def batch_tile(shape, buffers=2):
            if buffers != 2:
                return pl.BlockSpec(shape, lambda i: (i, 0),
                                    pipeline_mode=pl.Buffered(buffers))
            return pl.BlockSpec(shape, lambda i: (i, 0))

        def resident(shape):
            if single_buffer_weights:
                return pl.BlockSpec(shape, lambda i: (0, 0),
                                    pipeline_mode=pl.Buffered(1))
            return pl.BlockSpec(shape, lambda i: (0, 0))

        wb = w_bytes(1 if single_buffer_weights else 2)
        vmem_limit = int(min(limit_cap,
                             max(16 << 20, act_bytes(tb) + wb + (8 << 20))))

        return pl.pallas_call(
            _bp_ae_kernel,
            out_shape=(
                jax.ShapeDtypeStruct((padded_batch, latent_pad), out_dtype),
                jax.ShapeDtypeStruct((padded_batch, seq_len), out_dtype),
            ),
            grid_spec=pltpu.PrefetchScalarGridSpec(
                num_scalar_prefetch=0,
                grid=(num_tiles,),
                in_specs=[
                    batch_tile((tb, seq_len), x_buffers),   # x      (streamed)
                    resident((seq_len, latent_pad)),        # W_enc  (resident)
                    resident((1, latent_pad)),              # b_enc  (resident)
                    resident((latent_pad, seq_len)),        # W_dec  (resident)
                    resident((1, seq_len)),                 # b_dec  (resident)
                ],
                out_specs=[
                    batch_tile((tb, latent_pad)),           # bottleneck
                    batch_tile((tb, seq_len)),              # reconstruction
                ],
            ),
            compiler_params=pltpu.CompilerParams(
                dimension_semantics=("parallel",),          # shard batch axis
                vmem_limit_bytes=vmem_limit,
            ),
        )(x_in, params["w_enc"], params["b_enc"],
          params["w_dec"], params["b_dec"])

    try:
        z, out = run(single_buffer_weights=True)
    except Exception:
        # Fallback: default (double) buffering if Buffered(1) is rejected.
        z, out = run(single_buffer_weights=False)

    if padded_batch != batch:
        z, out = z[:batch], out[:batch]
    if latent_pad != latent_dim:
        z = z[:, :latent_dim]
    return out, z


def init_bp_ae_params(key, seq_len, latent_dim, dtype=jnp.float32):
    """Deterministic init matching nn.Linear default (U(-1/sqrt(fan_in), +))."""
    k1, k2, k3, k4 = jax.random.split(key, 4)
    bound_enc = 1.0 / (seq_len ** 0.5)
    bound_dec = 1.0 / (latent_dim ** 0.5)
    # Stored already transposed to (in, out).
    w_enc = jax.random.uniform(k1, (seq_len, latent_dim), dtype,
                               minval=-bound_enc, maxval=bound_enc)
    b_enc = jax.random.uniform(k2, (latent_dim,), dtype,
                               minval=-bound_enc, maxval=bound_enc)
    w_dec = jax.random.uniform(k3, (latent_dim, seq_len), dtype,
                               minval=-bound_dec, maxval=bound_dec)
    b_dec = jax.random.uniform(k4, (seq_len,), dtype,
                               minval=-bound_dec, maxval=bound_dec)
    return w_enc, b_enc, w_dec, b_dec


if __name__ == "__main__":
    # Small shapes consistent with BP_AE(seq_len, latent_dim).  At these tiny
    # shapes the kernel is overhead-bound; the structure (batch-streamed grid,
    # single-buffered resident weights, lane-dense latent, >=2 grid tiles when
    # possible) is what pays off at production batch / seq_len.
    seq_len, latent_dim, batch = 32, 8, 8

    key = jax.random.PRNGKey(0)
    kx, kp, kx2, kp2 = jax.random.split(key, 4)
    x = jax.random.normal(kx, (batch, seq_len), jnp.float32)
    w_enc, b_enc, w_dec, b_dec = init_bp_ae_params(kp, seq_len, latent_dim)

    z_ref = x @ w_enc + b_enc
    out_ref = z_ref @ w_dec + b_dec

    # --- f32 path -------------------------------------------------------------
    params = prepare_bp_ae_params(w_enc, b_enc, w_dec, b_dec)
    out, z = bp_ae_forward(x, params)
    out = jax.block_until_ready(out)
    z = jax.block_until_ready(z)
    assert z.shape == (batch, latent_dim)
    assert out.shape == (batch, seq_len)
    assert jnp.allclose(z, z_ref, atol=1e-5, rtol=1e-5)
    assert jnp.allclose(out, out_ref, atol=1e-5, rtol=1e-5)

    # --- bf16 streaming path (looser tolerance: bf16 MXU inputs) ---------------
    params_bf16 = prepare_bp_ae_params(w_enc, b_enc, w_dec, b_dec, use_bf16=True)
    out_b, z_b = bp_ae_forward(x.astype(jnp.bfloat16), params_bf16)
    out_b = jax.block_until_ready(out_b)
    assert jnp.allclose(z_b.astype(jnp.float32), z_ref, atol=0.1, rtol=0.1)
    assert jnp.allclose(out_b.astype(jnp.float32), out_ref, atol=0.1, rtol=0.1)

    # --- multi-tile (>= 2 grid steps) path -------------------------------------
    b2, s2, l2 = 64, 128, 8
    x2 = jax.random.normal(kx2, (b2, s2), jnp.float32)
    w_e2, b_e2, w_d2, b_d2 = init_bp_ae_params(kp2, s2, l2)
    params2 = prepare_bp_ae_params(w_e2, b_e2, w_d2, b_d2)
    out2, z2 = bp_ae_forward(x2, params2)
    out2 = jax.block_until_ready(out2)
    z2_ref = x2 @ w_e2 + b_e2
    out2_ref = z2_ref @ w_d2 + b_d2
    assert jnp.allclose(z2, z2_ref, atol=2e-4, rtol=2e-4)
    assert jnp.allclose(out2, out2_ref, atol=2e-4, rtol=2e-4)

    print("KERNEL_OK")
</pallas_src>

<mosaic_0001>
module attributes {stable_mosaic.version = 11 : i64} {
  func.func @_bp_ae_kernel(%arg0: i32, %arg1: memref<8x32xf32, #tpu.memory_space<vmem>>, %arg2: memref<32x128xf32, #tpu.memory_space<vmem>>, %arg3: memref<1x128xf32, #tpu.memory_space<vmem>>, %arg4: memref<128x32xf32, #tpu.memory_space<vmem>>, %arg5: memref<1x32xf32, #tpu.memory_space<vmem>>, %arg6: memref<8x128xf32, #tpu.memory_space<vmem>>, %arg7: memref<8x32xf32, #tpu.memory_space<vmem>>) attributes {dimension_semantics = [#tpu.dimension_semantics<parallel>], iteration_bounds = array<i64: 1>, scalar_prefetch = 0 : i64, scratch_operands = 0 : i64, tpu.core_type = #tpu.core_type<tc>, window_params = [{transform_indices = @transform_0, window_bounds = array<i64: 8, 32>}, {pipeline_mode = #tpu.pipeline_mode<synchronous>, transform_indices = @transform_1, window_bounds = array<i64: 32, 128>}, {pipeline_mode = #tpu.pipeline_mode<synchronous>, transform_indices = @transform_2, window_bounds = array<i64: 1, 128>}, {pipeline_mode = #tpu.pipeline_mode<synchronous>, transform_indices = @transform_3, window_bounds = array<i64: 128, 32>}, {pipeline_mode = #tpu.pipeline_mode<synchronous>, transform_indices = @transform_4, window_bounds = array<i64: 1, 32>}, {transform_indices = @transform_5, window_bounds = array<i64: 8, 128>}, {transform_indices = @transform_6, window_bounds = array<i64: 8, 32>}]} {
    %c0 = arith.constant 0 : index
    %c0_0 = arith.constant 0 : index
    %0 = vector.load %arg1[%c0, %c0_0] : memref<8x32xf32, #tpu.memory_space<vmem>>, vector<8x32xf32>
    %c0_1 = arith.constant 0 : index
    %c0_2 = arith.constant 0 : index
    %1 = vector.load %arg2[%c0_1, %c0_2] : memref<32x128xf32, #tpu.memory_space<vmem>>, vector<32x128xf32>
    %cst = arith.constant dense<0.000000e+00> : vector<8x128xf32>
    %2 = tpu.matmul %0, %1, %cst {dimension_numbers = #tpu.dot_dimension_numbers<[1], [0], [0], [1], [0, 0, 1, 1], [], []>} : vector<8x32xf32>, vector<32x128xf32>, vector<8x128xf32> -> vector<8x128xf32>
    %c0_3 = arith.constant 0 : index
    %c0_4 = arith.constant 0 : index
    %3 = vector.load %arg3[%c0_3, %c0_4] : memref<1x128xf32, #tpu.memory_space<vmem>>, vector<1x128xf32>
    %4 = vector.broadcast %3 : vector<1x128xf32> to vector<8x128xf32>
    %5 = arith.addf %2, %4 : vector<8x128xf32>
    %c0_5 = arith.constant 0 : index
    %c0_6 = arith.constant 0 : index
    %6 = vector.load %arg6[%c0_5, %c0_6] : memref<8x128xf32, #tpu.memory_space<vmem>>, vector<8x128xf32>
    tpu.vector_store %arg6[%c0_5, %c0_6], %5 {strides = array<i32>} : memref<8x128xf32, #tpu.memory_space<vmem>>, vector<8x128xf32>,
    %c0_7 = arith.constant 0 : index
    %c0_8 = arith.constant 0 : index
    %7 = vector.load %arg4[%c0_7, %c0_8] : memref<128x32xf32, #tpu.memory_space<vmem>>, vector<128x32xf32>
    %cst_9 = arith.constant dense<0.000000e+00> : vector<8x32xf32>
    %8 = tpu.matmul %5, %7, %cst_9 {dimension_numbers = #tpu.dot_dimension_numbers<[1], [0], [0], [1], [0, 0, 1, 1], [], []>} : vector<8x128xf32>, vector<128x32xf32>, vector<8x32xf32> -> vector<8x32xf32>
    %c0_10 = arith.constant 0 : index
    %c0_11 = arith.constant 0 : index
    %9 = vector.load %arg5[%c0_10, %c0_11] : memref<1x32xf32, #tpu.memory_space<vmem>>, vector<1x32xf32>
    %10 = vector.broadcast %9 : vector<1x32xf32> to vector<8x32xf32>
    %11 = arith.addf %8, %10 : vector<8x32xf32>
    %c0_12 = arith.constant 0 : index
    %c0_13 = arith.constant 0 : index
    %12 = vector.load %arg7[%c0_12, %c0_13] : memref<8x32xf32, #tpu.memory_space<vmem>>, vector<8x32xf32>
    tpu.vector_store %arg7[%c0_12, %c0_13], %11 {strides = array<i32>} : memref<8x32xf32, #tpu.memory_space<vmem>>, vector<8x32xf32>,
    return
  }
  func.func @transform_0(%arg0: i32) -> (i32, i32) {
    %c0_i32 = arith.constant 0 : i32
    %c0_i32_0 = arith.constant 0 : i32
    return %arg0, %c0_i32 : i32, i32
  }
  func.func @transform_1(%arg0: i32) -> (i32, i32) {
    %c0_i32 = arith.constant 0 : i32
    %c0_i32_0 = arith.constant 0 : i32
    %c0_i32_1 = arith.constant 0 : i32
    return %c0_i32, %c0_i32_0 : i32, i32
  }
  func.func @transform_2(%arg0: i32) -> (i32, i32) {
    %c0_i32 = arith.constant 0 : i32
    %c0_i32_0 = arith.constant 0 : i32
    %c0_i32_1 = arith.constant 0 : i32
    return %c0_i32, %c0_i32_0 : i32, i32
  }
  func.func @transform_3(%arg0: i32) -> (i32, i32) {
    %c0_i32 = arith.constant 0 : i32
    %c0_i32_0 = arith.constant 0 : i32
    %c0_i32_1 = arith.constant 0 : i32
    return %c0_i32, %c0_i32_0 : i32, i32
  }
  func.func @transform_4(%arg0: i32) -> (i32, i32) {
    %c0_i32 = arith.constant 0 : i32
    %c0_i32_0 = arith.constant 0 : i32
    %c0_i32_1 = arith.constant 0 : i32
    return %c0_i32, %c0_i32_0 : i32, i32
  }
  func.func @transform_5(%arg0: i32) -> (i32, i32) {
    %c0_i32 = arith.constant 0 : i32
    %c0_i32_0 = arith.constant 0 : i32
    return %arg0, %c0_i32 : i32, i32
  }
  func.func @transform_6(%arg0: i32) -> (i32, i32) {
    %c0_i32 = arith.constant 0 : i32
    %c0_i32_0 = arith.constant 0 : i32
    return %arg0, %c0_i32 : i32, i32
  }
}

module attributes {stable_mosaic.version = 11 : i64} {
  func.func @_bp_ae_kernel(%arg0: i32, %arg1: memref<8x32xf32, #tpu.memory_space<vmem>>, %arg2: memref<32x128xf32, #tpu.memory_space<vmem>>, %arg3: memref<1x128xf32, #tpu.memory_space<vmem>>, %arg4: memref<128x32xf32, #tpu.memory_space<vmem>>, %arg5: memref<1x32xf32, #tpu.memory_space<vmem>>, %arg6: memref<8x128xf32, #tpu.memory_space<vmem>>, %arg7: memref<8x32xf32, #tpu.memory_space<vmem>>) attributes {dimension_semantics = [#tpu.dimension_semantics<parallel>], iteration_bounds = array<i64: 1>, scalar_prefetch = 0 : i64, scratch_operands = 0 : i64, tpu.core_type = #tpu.core_type<tc>, window_params = [{transform_indices = @transform_0, window_bounds = array<i64: 8, 32>}, {pipeline_mode = #tpu.pipeline_mode<synchronous>, transform_indices = @transform_1, window_bounds = array<i64: 32, 128>}, {pipeline_mode = #tpu.pipeline_mode<synchronous>, transform_indices = @transform_2, window_bounds = array<i64: 1, 128>}, {pipeline_mode = #tpu.pipeline_mode<synchronous>, transform_indices = @transform_3, window_bounds = array<i64: 128, 32>}, {pipeline_mode = #tpu.pipeline_mode<synchronous>, transform_indices = @transform_4, window_bounds = array<i64: 1, 32>}, {transform_indices = @transform_5, window_bounds = array<i64: 8, 128>}, {transform_indices = @transform_6, window_bounds = array<i64: 8, 32>}]} {
    %c0 = arith.constant 0 : index
    %c0_0 = arith.constant 0 : index
    %0 = vector.load %arg1[%c0, %c0_0] : memref<8x32xf32, #tpu.memory_space<vmem>>, vector<8x32xf32>
    %c0_1 = arith.constant 0 : index
    %c0_2 = arith.constant 0 : index
    %1 = vector.load %arg2[%c0_1, %c0_2] : memref<32x128xf32, #tpu.memory_space<vmem>>, vector<32x128xf32>
    %cst = arith.constant dense<0.000000e+00> : vector<8x128xf32>
    %2 = tpu.matmul %0, %1, %cst {dimension_numbers = #tpu.dot_dimension_numbers<[1], [0], [0], [1], [0, 0, 1, 1], [], []>} : vector<8x32xf32>, vector<32x128xf32>, vector<8x128xf32> -> vector<8x128xf32>
    %c0_3 = arith.constant 0 : index
    %c0_4 = arith.constant 0 : index
    %3 = vector.load %arg3[%c0_3, %c0_4] : memref<1x128xf32, #tpu.memory_space<vmem>>, vector<1x128xf32>
    %4 = vector.broadcast %3 : vector<1x128xf32> to vector<8x128xf32>
    %5 = arith.addf %2, %4 : vector<8x128xf32>
    %c0_5 = arith.constant 0 : index
    %c0_6 = arith.constant 0 : index
    %6 = vector.load %arg6[%c0_5, %c0_6] : memref<8x128xf32, #tpu.memory_space<vmem>>, vector<8x128xf32>
    tpu.vector_store %arg6[%c0_5, %c0_6], %5 {strides = array<i32>} : memref<8x128xf32, #tpu.memory_space<vmem>>, vector<8x128xf32>,
    %c0_7 = arith.constant 0 : index
    %c0_8 = arith.constant 0 : index
    %7 = vector.load %arg4[%c0_7, %c0_8] : memref<128x32xf32, #tpu.memory_space<vmem>>, vector<128x32xf32>
    %cst_9 = arith.constant dense<0.000000e+00> : vector<8x32xf32>
    %8 = tpu.matmul %5, %7, %cst_9 {dimension_numbers = #tpu.dot_dimension_numbers<[1], [0], [0], [1], [0, 0, 1, 1], [], []>} : vector<8x128xf32>, vector<128x32xf32>, vector<8x32xf32> -> vector<8x32xf32>
    %c0_10 = arith.constant 0 : index
    %c0_11 = arith.constant 0 : index
    %9 = vector.load %arg5[%c0_10, %c0_11] : memref<1x32xf32, #tpu.memory_space<vmem>>, vector<1x32xf32>
    %10 = vector.broadcast %9 : vector<1x32xf32> to vector<8x32xf32>
    %11 = arith.addf %8, %10 : vector<8x32xf32>
    %c0_12 = arith.constant 0 : index
    %c0_13 = arith.constant 0 : index
    %12 = vector.load %arg7[%c0_12, %c0_13] : memref<8x32xf32, #tpu.memory_space<vmem>>, vector<8x32xf32>
    tpu.vector_store %arg7[%c0_12, %c0_13], %11 {strides = array<i32>} : memref<8x32xf32, #tpu.memory_space<vmem>>, vector<8x32xf32>,
    return
  }
  func.func @transform_0(%arg0: i32) -> (i32, i32) {
    %c0_i32 = arith.constant 0 : i32
    %c0_i32_0 = arith.constant 0 : i32
    return %arg0, %c0_i32 : i32, i32
  }
  func.func @transform_1(%arg0: i32) -> (i32, i32) {
    %c0_i32 = arith.constant 0 : i32
    %c0_i32_0 = arith.constant 0 : i32
    %c0_i32_1 = arith.constant 0 : i32
    return %c0_i32, %c0_i32_0 : i32, i32
  }
  func.func @transform_2(%arg0: i32) -> (i32, i32) {
    %c0_i32 = arith.constant 0 : i32
    %c0_i32_0 = arith.constant 0 : i32
    %c0_i32_1 = arith.constant 0 : i32
    return %c0_i32, %c0_i32_0 : i32, i32
  }
  func.func @transform_3(%arg0: i32) -> (i32, i32) {
    %c0_i32 = arith.constant 0 : i32
    %c0_i32_0 = arith.constant 0 : i32
    %c0_i32_1 = arith.constant 0 : i32
    return %c0_i32, %c0_i32_0 : i32, i32
  }
  func.func @transform_4(%arg0: i32) -> (i32, i32) {
    %c0_i32 = arith.constant 0 : i32
    %c0_i32_0 = arith.constant 0 : i32
    %c0_i32_1 = arith.constant 0 : i32
    return %c0_i32, %c0_i32_0 : i32, i32
  }
  func.func @transform_5(%arg0: i32) -> (i32, i32) {
    %c0_i32 = arith.constant 0 : i32
    %c0_i32_0 = arith.constant 0 : i32
    return %arg0, %c0_i32 : i32, i32
  }
  func.func @transform_6(%arg0: i32) -> (i32, i32) {
    %c0_i32 = arith.constant 0 : i32
    %c0_i32_0 = arith.constant 0 : i32
    return %arg0, %c0_i32 : i32, i32
  }
}

</mosaic_0001>

<bundles_post_ra>
// kernel: tpu_custom_call.1
= control target key start
LH: loop header
LB: loop body
LE: loop exit
PB: predicated region body
PF: predicated region fallthrough
CT: control target
= control target key end

     0   :  { %12 = vsyncpa [#allocation3], 0  ;;  %v387_v3 = vmov 0.0|0.0   ;;  %vm388_vm0 = vmmov 0   ;;  %v389_v6 = vmov 0.0   ;;  %s522_s0 = inlined_call_operand.vmem [shape: f32[8,32], index: 0, kind: input, shape index: {}]   ;;  %s523_s1 = inlined_call_operand.vmem [shape: f32[32,128], index: 1, kind: input, shape index: {}]   ;;  %s524_s2 = inlined_call_operand.vmem [shape: f32[1,128], index: 2, kind: input, shape index: {}]   ;;  %s525_s3 = inlined_call_operand.vmem [shape: f32[128,32], index: 3, kind: input, shape index: {}]   ;;  %s526_s4 = inlined_call_operand.vmem [shape: f32[1,32], index: 4, kind: input, shape index: {}]   ;;  %s527_s5 = inlined_call_operand.hbm [shape: f32[8,128], index: 5, kind: output, shape index: {0}]   ;;  %s528_s6 = inlined_call_operand.hbm [shape: f32[8,32], index: 6, kind: output, shape index: {1}]  }
   0x1   :  { %v25_v0 = vld [vmem:[%s523_s1] sm:$0xff]  ;;  %v26_v1 = vld [vmem:[%s523_s1 + $0x8] sm:$0xff]  ;;  %v27_v2 = vld [vmem:[%s523_s1 + $0x10] sm:$0xff]  ;;  %304 = vmatprep.subr.bf16.mxu0 %v387_v3  ;;  %266 = vmatprep.mubr.msk.f32.mxu0 %vm388_vm0, %v389_v6 }
   0x2   :  { %v305_v4 = vpack.c.bf16 %v26_v1, %v25_v0  ;;  %v28_v5 = vld [vmem:[%s523_s1 + $0x18] sm:$0xff]  ;;  %v111_v7 = vld [vmem:[%s525_s3] sm:$0xff]  ;;  %310 = vmatprep.subr.bf16.mxu1 %v387_v3  ;;  %v112_v8 = vld [vmem:[%s525_s3 + $0x8] sm:$0xff]  ;;  %301 = vmatprep.mubr.msk.f32.mxu1 %vm388_vm0, %v389_v6 }
   0x3   :  { %v113_v9 = vld [vmem:[%s525_s3 + $0x10] sm:$0xff]  ;;  %v114_v10 = vld [vmem:[%s525_s3 + $0x18] sm:$0xff]  ;;  %v308_v11 = vpack.c.bf16 %v28_v5, %v27_v2  ;;  %v311_v12 = vpack.c.bf16 %v112_v8, %v111_v7  ;;  %v115_v14 = vld [vmem:[%s525_s3 + $0x20] sm:$0xff] }
   0x4   :  { %306 = vmatpush3.bf16.msra.mxu0 %v305_v4  ;;  %v314_v13 = vpack.c.bf16 %v114_v10, %v113_v9  ;;  %v116_v15 = vld [vmem:[%s525_s3 + $0x28] sm:$0xff] }
   0x5   :  { %307 = vmatprep.subr.bf16.mxu0 %v387_v3  ;;  %312 = vmatpush3.bf16.msra.mxu1 %v311_v12 }
   0x6   :  { %313 = vmatprep.subr.bf16.mxu1 %v387_v3 }
   0x7   :  { %13 = vsyncpa [#allocation5], 0  ;;  %v24_v16 = vld [vmem:[%s522_s0] sm:$0xff]  ;;  %vm36_vm1 = vcmask 261120   ;;  %v317_v17 = vpack.c.bf16 %v116_v15, %v115_v14  ;;  %v117_v18 = vld [vmem:[%s525_s3 + $0x30] sm:$0xff]  ;;  %s390_s14 = smov [#allocation2]  }
   0x8   :  { %309 = vmatpush3.bf16.msra.mxu0 %v308_v11  ;;  %v118_v19 = vld [vmem:[%s525_s3 + $0x38] sm:$0xff]  ;;  %v119_v21 = vld [vmem:[%s525_s3 + $0x40] sm:$0xff]  ;;  %v120_v22 = vld [vmem:[%s525_s3 + $0x48] sm:$0xff]  ;;  %s211_s15 = sshll.u32 %s390_s14, 4  ;;  %s212_s15 = int_to_ptr.vmem [resolvable:$true] %s211_s15 }
   0x9   :  { %315 = vmatpush3.bf16.msra.mxu1 %v314_v13  ;;  %v320_v20 = vpack.c.bf16 %v118_v19, %v117_v18  ;;  %v323_v23 = vpack.c.bf16 %v120_v22, %v119_v21  ;;  %v121_v24 = vld [vmem:[%s525_s3 + $0x50] sm:$0xff]  ;;  %v122_v25 = vld [vmem:[%s525_s3 + $0x58] sm:$0xff]  ;;  %v123_v27 = vld [vmem:[%s525_s3 + $0x60] sm:$0xff]  ;;  %s339_s16 = scalar_lea.vmem %s212_s15, 128  ;;  %p344_p1 = scmp.lt.s32.totalorder %s212_s15, %s212_s15 }
   0xa   :  { %316 = vmatprep.subr.bf16.mxu1 %v387_v3  ;;  %v326_v26 = vpack.c.bf16 %v122_v25, %v121_v24  ;;  %v124_v28 = vld [vmem:[%s525_s3 + $0x68] sm:$0xff]  ;;  %v125_v30 = vld [vmem:[%s525_s3 + $0x70] sm:$0xff]  ;;  %v126_v31 = vld [vmem:[%s525_s3 + $0x78] sm:$0xff]  ;;  %p340_p0 = scmp.ne.s32.totalorder %s212_s15, %s339_s16  ;;  %p345_p2 = scmp.lt.s32.totalorder %s339_s16, %s339_s16 }
   0xb   :  { %267 = vmatmul.mubr.msk.f32.vlgmr.msra.gmra.mrb[0].mxu0 %vm36_vm1, %v24_v16  ;;  %v329_v29 = vpack.c.bf16 %v124_v28, %v123_v27  ;;  %v332_v32 = vpack.c.bf16 %v126_v31, %v125_v30  ;;  %v233_v33 = vld [vmem:[%s524_s2] ss:$0 sm:$0xff] }
   0xc   :  { %p346_p3 = por %p345_p2, %p344_p1 }
   0xd   :  { %318 = vmatpush3.bf16.msra.mxu1 %v317_v17 }
   0xe   :  { %319 = vmatprep.subr.bf16.mxu1 %v387_v3  ;;  %p347_p4 = pnand %p346_p3, %p340_p0 }
  0x11   :  { %321 = vmatpush3.bf16.msra.mxu1 %v320_v20 }
  0x12   :  { %322 = vmatprep.subr.bf16.mxu1 %v387_v3 }
  0x15   :  { %324 = vmatpush3.bf16.msra.mxu1 %v323_v23 }
  0x16   :  { %325 = vmatprep.subr.bf16.mxu1 %v387_v3 }
  0x19   :  { %327 = vmatpush3.bf16.msra.mxu1 %v326_v26 }
  0x1a   :  { %328 = vmatprep.subr.bf16.mxu1 %v387_v3 }
  0x1d   :  { %330 = vmatpush3.bf16.msra.mxu1 %v329_v29 }
  0x1e   :  { %331 = vmatprep.subr.bf16.mxu1 %v387_v3 }
  0x21   :  { %333 = vmatpush3.bf16.msra.mxu1 %v332_v32 }
  0xde   :  { %v106_v34 = vpop.f32.mrb[0].mxu0 }
  0xdf   :  { %v107_v35 = vadd.f32 %v233_v33, %v106_v34  ;;  %v268_v36 = vpop.f32.mrb[1].mxu0 }
  0xe1   :  { %110 = vst [vmem:[#allocation2] sm:$0xff] %v107_v35  ;;  %302 = vmatmul.mubr.f32.vlgmr.msra.gmra.mrb[0].mxu1 %v107_v35 }
  0xe2   :  { %350 = shalt.err (!%p347_p4)
}
  0xe3   :  { %s351_s18 = scalar_lea.hbm %s527_s5, 128 }
  0xe4   :  { %p352_p5 = scmp.ne.s32.totalorder %s527_s5, %s351_s18  ;;  %p355_p6 = scmp.lt.u32.totalorder %s351_s18, %s527_s5 }
  0xe6   :  { %p357_p7 = pnand %p355_p6, %p352_p5 }
  0xe8   :  { %360 = shalt.err (!%p357_p7)
}
  0xe9   :  { %214 = dma.vmem_to_hbm [thread:$0]  %s212_s15, 128, %s527_s5, [#allocation3]   ;;  %v235_v37 = vld [vmem:[%s526_s4] ss:$0 sm:$0xff] }
  0xea   :  { %s391_s25 = smov [#allocation4]  }
  0xeb   :  { %s221_s26 = sshll.u32 %s391_s25, 4  ;;  %s222_s26 = int_to_ptr.vmem [resolvable:$true] %s221_s26 }
  0xec   :  { %s361_s27 = scalar_lea.vmem %s222_s26, 128  ;;  %p366_p9 = scmp.lt.s32.totalorder %s222_s26, %s222_s26 }
  0xed   :  { %p362_p8 = scmp.ne.s32.totalorder %s222_s26, %s361_s27  ;;  %p367_p10 = scmp.lt.s32.totalorder %s361_s27, %s361_s27 }
  0xef   :  { %p368_p11 = por %p367_p10, %p366_p9 }
  0xf1   :  { %p369_p12 = pnand %p368_p11, %p362_p8 }
 0x1b4   :  { %v200_v38 = vpop.f32.mrb[0].mxu1 }
 0x1b5   :  { %v201_v39 = vadd.f32 %v235_v37, %v200_v38  ;;  %v303_v40 = vpop.f32.mrb[1].mxu1 }
 0x1b7   :  { %204 = vst.msk [vmem:[#allocation4] sm:$0xff] %vm36_vm1, %v201_v39 }
 0x1b8   :  { %372 = shalt.err (!%p369_p12)
}
 0x1b9   :  { %s373_s29 = scalar_lea.hbm %s528_s6, 128 }
 0x1ba   :  { %p374_p13 = scmp.ne.s32.totalorder %s528_s6, %s373_s29  ;;  %p377_p0 = scmp.lt.u32.totalorder %s373_s29, %s528_s6 }
 0x1bc   :  { %p379_p1 = pnand %p377_p0, %p374_p13 }
 0x1be   :  { %382 = shalt.err (!%p379_p1)
}
 0x1bf   :  { %224 = dma.vmem_to_hbm [thread:$0]  %s222_s26, 128, %s528_s6, [#allocation5]  }
 0x1c0   :  { %383 = dma.done.wait [#allocation3], 128  }
 0x1c1   :  { %384 = vsyncadd [#allocation3], 4294967168 }
 0x1c2   :  { %385 = dma.done.wait [#allocation5], 128  }
 0x1c3   :  { %386 = vsyncadd [#allocation5], 4294967168 }
 0x1c4   :  { %231 = vsyncpa [#allocation3], 1 }
 0x1c5   :  { %232 = vsyncpa [#allocation5], 1 }

// kernel: tpu_custom_call.1
= control target key start
LH: loop header
LB: loop body
LE: loop exit
PB: predicated region body
PF: predicated region fallthrough
CT: control target
= control target key end

     0   :  { %12 = vsyncpa [#allocation3], 0  ;;  %v387_v3 = vmov 0.0|0.0   ;;  %vm388_vm0 = vmmov 0   ;;  %v389_v6 = vmov 0.0   ;;  %s522_s0 = inlined_call_operand.vmem [shape: f32[8,32], index: 0, kind: input, shape index: {}]   ;;  %s523_s1 = inlined_call_operand.vmem [shape: f32[32,128], index: 1, kind: input, shape index: {}]   ;;  %s524_s2 = inlined_call_operand.vmem [shape: f32[1,128], index: 2, kind: input, shape index: {}]   ;;  %s525_s3 = inlined_call_operand.vmem [shape: f32[128,32], index: 3, kind: input, shape index: {}]   ;;  %s526_s4 = inlined_call_operand.vmem [shape: f32[1,32], index: 4, kind: input, shape index: {}]   ;;  %s527_s5 = inlined_call_operand.hbm [shape: f32[8,128], index: 5, kind: output, shape index: {0}]   ;;  %s528_s6 = inlined_call_operand.hbm [shape: f32[8,32], index: 6, kind: output, shape index: {1}]  }
   0x1   :  { %v25_v0 = vld [vmem:[%s523_s1] sm:$0xff]  ;;  %v26_v1 = vld [vmem:[%s523_s1 + $0x8] sm:$0xff]  ;;  %v27_v2 = vld [vmem:[%s523_s1 + $0x10] sm:$0xff]  ;;  %304 = vmatprep.subr.bf16.mxu0 %v387_v3  ;;  %266 = vmatprep.mubr.msk.f32.mxu0 %vm388_vm0, %v389_v6 }
   0x2   :  { %v305_v4 = vpack.c.bf16 %v26_v1, %v25_v0  ;;  %v28_v5 = vld [vmem:[%s523_s1 + $0x18] sm:$0xff]  ;;  %v111_v7 = vld [vmem:[%s525_s3] sm:$0xff]  ;;  %310 = vmatprep.subr.bf16.mxu1 %v387_v3  ;;  %v112_v8 = vld [vmem:[%s525_s3 + $0x8] sm:$0xff]  ;;  %301 = vmatprep.mubr.msk.f32.mxu1 %vm388_vm0, %v389_v6 }
   0x3   :  { %v113_v9 = vld [vmem:[%s525_s3 + $0x10] sm:$0xff]  ;;  %v114_v10 = vld [vmem:[%s525_s3 + $0x18] sm:$0xff]  ;;  %v308_v11 = vpack.c.bf16 %v28_v5, %v27_v2  ;;  %v311_v12 = vpack.c.bf16 %v112_v8, %v111_v7  ;;  %v115_v14 = vld [vmem:[%s525_s3 + $0x20] sm:$0xff] }
   0x4   :  { %306 = vmatpush3.bf16.msra.mxu0 %v305_v4  ;;  %v314_v13 = vpack.c.bf16 %v114_v10, %v113_v9  ;;  %v116_v15 = vld [vmem:[%s525_s3 + $0x28] sm:$0xff] }
   0x5   :  { %307 = vmatprep.subr.bf16.mxu0 %v387_v3  ;;  %312 = vmatpush3.bf16.msra.mxu1 %v311_v12 }
   0x6   :  { %313 = vmatprep.subr.bf16.mxu1 %v387_v3 }
   0x7   :  { %13 = vsyncpa [#allocation5], 0  ;;  %v24_v16 = vld [vmem:[%s522_s0] sm:$0xff]  ;;  %vm36_vm1 = vcmask 261120   ;;  %v317_v17 = vpack.c.bf16 %v116_v15, %v115_v14  ;;  %v117_v18 = vld [vmem:[%s525_s3 + $0x30] sm:$0xff]  ;;  %s390_s14 = smov [#allocation2]  }
   0x8   :  { %309 = vmatpush3.bf16.msra.mxu0 %v308_v11  ;;  %v118_v19 = vld [vmem:[%s525_s3 + $0x38] sm:$0xff]  ;;  %v119_v21 = vld [vmem:[%s525_s3 + $0x40] sm:$0xff]  ;;  %v120_v22 = vld [vmem:[%s525_s3 + $0x48] sm:$0xff]  ;;  %s211_s15 = sshll.u32 %s390_s14, 4  ;;  %s212_s15 = int_to_ptr.vmem [resolvable:$true] %s211_s15 }
   0x9   :  { %315 = vmatpush3.bf16.msra.mxu1 %v314_v13  ;;  %v320_v20 = vpack.c.bf16 %v118_v19, %v117_v18  ;;  %v323_v23 = vpack.c.bf16 %v120_v22, %v119_v21  ;;  %v121_v24 = vld [vmem:[%s525_s3 + $0x50] sm:$0xff]  ;;  %v122_v25 = vld [vmem:[%s525_s3 + $0x58] sm:$0xff]  ;;  %v123_v27 = vld [vmem:[%s525_s3 + $0x60] sm:$0xff]  ;;  %s339_s16 = scalar_lea.vmem %s212_s15, 128  ;;  %p344_p1 = scmp.lt.s32.totalorder %s212_s15, %s212_s15 }
   0xa   :  { %316 = vmatprep.subr.bf16.mxu1 %v387_v3  ;;  %v326_v26 = vpack.c.bf16 %v122_v25, %v121_v24  ;;  %v124_v28 = vld [vmem:[%s525_s3 + $0x68] sm:$0xff]  ;;  %v125_v30 = vld [vmem:[%s525_s3 + $0x70] sm:$0xff]  ;;  %v126_v31 = vld [vmem:[%s525_s3 + $0x78] sm:$0xff]  ;;  %p340_p0 = scmp.ne.s32.totalorder %s212_s15, %s339_s16  ;;  %p345_p2 = scmp.lt.s32.totalorder %s339_s16, %s339_s16 }
   0xb   :  { %267 = vmatmul.mubr.msk.f32.vlgmr.msra.gmra.mrb[0].mxu0 %vm36_vm1, %v24_v16  ;;  %v329_v29 = vpack.c.bf16 %v124_v28, %v123_v27  ;;  %v332_v32 = vpack.c.bf16 %v126_v31, %v125_v30  ;;  %v233_v33 = vld [vmem:[%s524_s2] ss:$0 sm:$0xff] }
   0xc   :  { %p346_p3 = por %p345_p2, %p344_p1 }
   0xd   :  { %318 = vmatpush3.bf16.msra.mxu1 %v317_v17 }
   0xe   :  { %319 = vmatprep.subr.bf16.mxu1 %v387_v3  ;;  %p347_p4 = pnand %p346_p3, %p340_p0 }
  0x11   :  { %321 = vmatpush3.bf16.msra.mxu1 %v320_v20 }
  0x12   :  { %322 = vmatprep.subr.bf16.mxu1 %v387_v3 }
  0x15   :  { %324 = vmatpush3.bf16.msra.mxu1 %v323_v23 }
  0x16   :  { %325 = vmatprep.subr.bf16.mxu1 %v387_v3 }
  0x19   :  { %327 = vmatpush3.bf16.msra.mxu1 %v326_v26 }
  0x1a   :  { %328 = vmatprep.subr.bf16.mxu1 %v387_v3 }
  0x1d   :  { %330 = vmatpush3.bf16.msra.mxu1 %v329_v29 }
  0x1e   :  { %331 = vmatprep.subr.bf16.mxu1 %v387_v3 }
  0x21   :  { %333 = vmatpush3.bf16.msra.mxu1 %v332_v32 }
  0xde   :  { %v106_v34 = vpop.f32.mrb[0].mxu0 }
  0xdf   :  { %v107_v35 = vadd.f32 %v233_v33, %v106_v34  ;;  %v268_v36 = vpop.f32.mrb[1].mxu0 }
  0xe1   :  { %110 = vst [vmem:[#allocation2] sm:$0xff] %v107_v35  ;;  %302 = vmatmul.mubr.f32.vlgmr.msra.gmra.mrb[0].mxu1 %v107_v35 }
  0xe2   :  { %350 = shalt.err (!%p347_p4)
}
  0xe3   :  { %s351_s18 = scalar_lea.hbm %s527_s5, 128 }
  0xe4   :  { %p352_p5 = scmp.ne.s32.totalorder %s527_s5, %s351_s18  ;;  %p355_p6 = scmp.lt.u32.totalorder %s351_s18, %s527_s5 }
  0xe6   :  { %p357_p7 = pnand %p355_p6, %p352_p5 }
  0xe8   :  { %360 = shalt.err (!%p357_p7)
}
  0xe9   :  { %214 = dma.vmem_to_hbm [thread:$0]  %s212_s15, 128, %s527_s5, [#allocation3]   ;;  %v235_v37 = vld [vmem:[%s526_s4] ss:$0 sm:$0xff] }
  0xea   :  { %s391_s25 = smov [#allocation4]  }
  0xeb   :  { %s221_s26 = sshll.u32 %s391_s25, 4  ;;  %s222_s26 = int_to_ptr.vmem [resolvable:$true] %s221_s26 }
  0xec   :  { %s361_s27 = scalar_lea.vmem %s222_s26, 128  ;;  %p366_p9 = scmp.lt.s32.totalorder %s222_s26, %s222_s26 }
  0xed   :  { %p362_p8 = scmp.ne.s32.totalorder %s222_s26, %s361_s27  ;;  %p367_p10 = scmp.lt.s32.totalorder %s361_s27, %s361_s27 }
  0xef   :  { %p368_p11 = por %p367_p10, %p366_p9 }
  0xf1   :  { %p369_p12 = pnand %p368_p11, %p362_p8 }
 0x1b4   :  { %v200_v38 = vpop.f32.mrb[0].mxu1 }
 0x1b5   :  { %v201_v39 = vadd.f32 %v235_v37, %v200_v38  ;;  %v303_v40 = vpop.f32.mrb[1].mxu1 }
 0x1b7   :  { %204 = vst.msk [vmem:[#allocation4] sm:$0xff] %vm36_vm1, %v201_v39 }
 0x1b8   :  { %372 = shalt.err (!%p369_p12)
}
 0x1b9   :  { %s373_s29 = scalar_lea.hbm %s528_s6, 128 }
 0x1ba   :  { %p374_p13 = scmp.ne.s32.totalorder %s528_s6, %s373_s29  ;;  %p377_p0 = scmp.lt.u32.totalorder %s373_s29, %s528_s6 }
 0x1bc   :  { %p379_p1 = pnand %p377_p0, %p374_p13 }
 0x1be   :  { %382 = shalt.err (!%p379_p1)
}
 0x1bf   :  { %224 = dma.vmem_to_hbm [thread:$0]  %s222_s26, 128, %s528_s6, [#allocation5]  }
 0x1c0   :  { %383 = dma.done.wait [#allocation3], 128  }
 0x1c1   :  { %384 = vsyncadd [#allocation3], 4294967168 }
 0x1c2   :  { %385 = dma.done.wait [#allocation5], 128  }
 0x1c3   :  { %386 = vsyncadd [#allocation5], 4294967168 }
 0x1c4   :  { %231 = vsyncpa [#allocation3], 1 }
 0x1c5   :  { %232 = vsyncpa [#allocation5], 1 }

</bundles_post_ra>
